<compile_context>
chip_gen: v5e
topology: v5e:2x2
jax: 0.10.0
libtpu: 0.0.40
codegen_flags: <defaults>
</compile_context>

<pallas_src>
import jax
import jax.numpy as jnp
from jax.experimental import pallas as pl
from jax.experimental.pallas import tpu as pltpu

NUM_CLASSES = 16          # no-object class is implicit (one-hot all zeros)
FOCAL_ALPHA = 0.25
POS_GAMMA = 2.0           # kernel/correction specialize gamma == 2
NEG_GAMMA = 2.0
_EPS = 1e-12
_PAD_LOGIT = -20.0        # padded-query logits: sigmoid ~ 2e-9 -> focal ~ 0
_PAD_LOGIT_LAST = -10.0   # padded-query last class strictly dominates -> card 0

assert POS_GAMMA == 2.0 and NEG_GAMMA == 2.0, "kernel specializes gamma == 2"


# --------------------------------------------------------------------------
# Fused kernel: focal-loss negative baseline + cardinality, one pass / block.
# --------------------------------------------------------------------------
def _fused_logits_kernel(xf_ref, xn_ref, out_ref):
    """Per batch block:
       xf_ref : (bt, R, 128)  lane-dense flat view (query-major, class-minor)
       xn_ref : (bt, Qp, C)   natural view (classes on lanes)
       out_ref: (bt, 8, 128)  row 0 = per-lane focal(all-negative) partials
                              row 1 = per-image non-empty-box count (splat)
    """
    # ---- sigmoid focal loss, all-targets-negative baseline -----------------
    x = xf_ref[...].astype(jnp.float32)                 # upcast in-kernel
    e = jnp.exp(-jnp.abs(x))                            # one EUP exp / element
    inv1pe = pl.reciprocal(1.0 + e, approx=True)        # EUP slot (~free); fwd-loss only
    p = jnp.where(x >= 0.0, inv1pe, e * inv1pe)         # sigmoid(x)
    # softplus(x) == BCE_with_logits(x, target=0); log1p would only matter for
    # |x| >~ 16 where p^2 already kills the term, so log(1+e) is sufficient.
    ce_neg = jnp.maximum(x, 0.0) + jnp.log(1.0 + e)
    focal_neg = ((1.0 - FOCAL_ALPHA) * ce_neg) * (p * p)
    # Per-lane partial sums (sublane-axis reduce only; 128-lane finish in JAX).
    focal_lanes = jnp.sum(focal_neg, axis=1, keepdims=True)      # (bt, 1, 128)

    # ---- cardinality: #(argmax_c logits != C-1) per image ------------------
    xn = xn_ref[...].astype(jnp.float32)                # (bt, Qp, C)
    c = xn.shape[2]
    mx_other = jnp.max(xn[:, :, :c - 1], axis=2, keepdims=True)  # (bt, Qp, 1)
    last = xn[:, :, c - 1:]                                       # (bt, Qp, 1)
    # torch.argmax takes the first max on ties => argmax != C-1  <=>  last <= mx_other
    non_empty = (last <= mx_other).astype(jnp.float32)
    card = jnp.sum(non_empty, axis=(1, 2), keepdims=True)         # (bt, 1, 1)

    # ---- single merged lane-dense output block ------------------------------
    row = jax.lax.broadcasted_iota(jnp.int32, out_ref.shape, 1)
    blk = jnp.where(row == 0, focal_lanes, 0.0)
    blk = jnp.where(row == 1, card, blk)
    out_ref[...] = blk


def _pick_batch_tile(batch, row_bytes, target_bytes=2 * 1024 * 1024):
    """Largest divisor of `batch` with streamed block <= target_bytes, while
    keeping >= 2 grid steps whenever batch >= 2 (both v7x TensorCores busy)."""
    max_bt = batch if batch < 2 else batch // 2
    bt = 1
    for cand in range(1, max_bt + 1):
        if batch % cand == 0 and cand * row_bytes <= target_bytes:
            bt = cand
    return bt


def fused_focal_cardinality(pred_logits):
    """One fused pass over pred_logits.

    Returns:
      focal_neg_sum: scalar f32 — sum over ALL (b,q,c) of the focal loss with
                     every target treated as negative.
      card_pred:     (B,) f32   — per-image count of queries whose argmax class
                     is not the last class.
    """
    B, Q, C = pred_logits.shape
    if 128 % C != 0:
        raise NotImplementedError("fused kernel assumes num_classes divides 128")
    qmult = 128 // C                       # queries per 128-lane vreg row
    Qp = ((Q + qmult - 1) // qmult) * qmult

    x_nat = pred_logits
    if Qp != Q:
        # Pad queries so all classes are very negative and the *last* class
        # strictly dominates: padded queries add ~0 focal and 0 cardinality.
        pad_row = jnp.full((C,), _PAD_LOGIT, pred_logits.dtype)
        pad_row = pad_row.at[C - 1].set(jnp.asarray(_PAD_LOGIT_LAST, pred_logits.dtype))
        pad_blk = jnp.broadcast_to(pad_row, (B, Qp - Q, C))
        x_nat = jnp.concatenate([pred_logits, pad_blk], axis=1)

    R = (Qp * C) // 128
    x_flat = x_nat.reshape(B, R, 128)      # free row-major reshape; no transpose

    # Streamed bytes per batch row = the two views of the logits (native dtype).
    row_bytes = 2 * Qp * C * x_nat.dtype.itemsize
    bt = _pick_batch_tile(B, max(row_bytes, 1))
    nb = B // bt

    n_elem = B * Qp * C
    cost = pl.CostEstimate(
        flops=24 * n_elem,
        transcendentals=3 * n_elem,
        bytes_accessed=2 * n_elem * x_nat.dtype.itemsize + B * 8 * 128 * 4,
    )

    out = pl.pallas_call(
        _fused_logits_kernel,
        out_shape=jax.ShapeDtypeStruct((B, 8, 128), jnp.float32),
        grid_spec=pltpu.PrefetchScalarGridSpec(
            num_scalar_prefetch=0,
            grid=(nb,),
            in_specs=[
                pl.BlockSpec((bt, R, 128), lambda b: (b, 0, 0)),
                pl.BlockSpec((bt, Qp, C), lambda b: (b, 0, 0)),
            ],
            out_specs=pl.BlockSpec((bt, 8, 128), lambda b: (b, 0, 0)),
        ),
        compiler_params=pltpu.CompilerParams(
            dimension_semantics=("parallel",),
            vmem_limit_bytes=48 * 1024 * 1024,   # headroom incl. v5e's 16 MiB default
        ),
        cost_estimate=cost,
    )(x_flat, x_nat)

    focal_neg_sum = jnp.sum(out[:, 0, :])
    card_pred = out[:, 1, 0]
    return focal_neg_sum, card_pred


# --------------------------------------------------------------------------
# Tiny plain-JAX pieces (matched boxes, positive-class focal correction).
# --------------------------------------------------------------------------
def _generalized_box_iou_diag(src_cxcywh, tgt_cxcywh, eps=_EPS):
    def to_xyxy(b):
        cx, cy, w, h = b[..., 0], b[..., 1], b[..., 2], b[..., 3]
        return cx - 0.5 * w, cy - 0.5 * h, cx + 0.5 * w, cy + 0.5 * h

    sx0, sy0, sx1, sy1 = to_xyxy(src_cxcywh)
    tx0, ty0, tx1, ty1 = to_xyxy(tgt_cxcywh)
    area_s = (sx1 - sx0) * (sy1 - sy0)
    area_t = (tx1 - tx0) * (ty1 - ty0)
    iw = jnp.maximum(jnp.minimum(sx1, tx1) - jnp.maximum(sx0, tx0), 0.0)
    ih = jnp.maximum(jnp.minimum(sy1, ty1) - jnp.maximum(sy0, ty0), 0.0)
    inter = iw * ih
    union = area_s + area_t - inter
    iou = inter / jnp.maximum(union, eps)
    enc = ((jnp.maximum(sx1, tx1) - jnp.minimum(sx0, tx0))
           * (jnp.maximum(sy1, ty1) - jnp.minimum(sy0, ty0)))
    return iou - (enc - union) / jnp.maximum(enc, eps)


# --------------------------------------------------------------------------
# SetCriterion.forward equivalent (losses = labels, cardinality, boxes)
# --------------------------------------------------------------------------
def set_criterion_forward(outputs, targets, cls_labels, mask_labels,
                          num_classes=NUM_CLASSES,
                          losses=("labels", "cardinality", "boxes")):
    pred_logits = outputs["pred_logits"]              # (B, Q, C)
    pred_boxes = outputs["pred_boxes"]                # (B, Q, 4)
    labels = targets["labels"]                        # (B, G)
    gt_boxes = targets["boxes"]                       # (B, G, 4)
    B, Q, C = pred_logits.shape
    G = labels.shape[1]

    # TODO(synk): Hungarian assignment (scipy.linear_sum_assignment inside the
    # matcher) has no Pallas/TPU equivalent; a fixed deterministic matching
    # (GT j <-> query j) is used in place of self.matcher.
    num_boxes = float(max(B * G, 1))

    focal_neg_sum, card_pred = fused_focal_cardinality(pred_logits)

    out = {}
    if "labels" in losses:
        # Exact positive-class correction: only the B*G matched (query, class)
        # logits differ from the all-negative baseline summed by the kernel.
        b_idx = jnp.arange(B)[:, None]
        q_idx = jnp.arange(G)[None, :]
        x_pos = pred_logits[b_idx, q_idx, labels.astype(jnp.int32)].astype(jnp.float32)
        p = jax.nn.sigmoid(x_pos)
        ce_pos = jax.nn.softplus(-x_pos)              # BCE_with_logits(x, 1)
        ce_neg = jax.nn.softplus(x_pos)               # BCE_with_logits(x, 0)
        delta = (FOCAL_ALPHA * (1.0 - p) ** 2 * ce_pos
                 - (1.0 - FOCAL_ALPHA) * p ** 2 * ce_neg)
        # TODO(synk): focal_loss_mask (positive_missing_annotation_mask /
        # duplicate-TP masking) needs external model_util + matcher state; it
        # defaults to all-ones, so it is dropped instead of streamed.
        focal_sum = focal_neg_sum + jnp.sum(delta)
        # loss_ce = focal.mean(1).sum()/num_boxes * Q  ==  focal_sum / num_boxes
        out["loss_ce"] = focal_sum / num_boxes

        # class_error (logging metric) — tiny gather + argmax, plain JAX.
        matched_logits = pred_logits[:, :G, :]
        acc = jnp.mean((jnp.argmax(matched_logits, axis=-1)
                        == labels).astype(jnp.float32)) * 100.0
        out["class_error"] = 100.0 - acc

    if "cardinality" in losses:
        tgt_lengths = jnp.full((B,), float(G), jnp.float32)
        out["cardinality_error"] = jnp.mean(jnp.abs(card_pred - tgt_lengths))

    if "boxes" in losses:
        # Matched boxes are tiny (B*G elements); L1 + GIoU in plain JAX.
        src = pred_boxes[:, :G, :].astype(jnp.float32)
        tgt = gt_boxes.astype(jnp.float32)
        out["loss_bbox"] = jnp.sum(jnp.abs(src - tgt)) / num_boxes
        giou = _generalized_box_iou_diag(src, tgt)
        out["loss_giou"] = jnp.sum(1.0 - giou) / num_boxes

    # TODO(synk): aux_outputs / enc_outputs loops and the 'masks'/'reference'
    # losses (nested tensors, bilinear interpolate) are not reproduced here.
    return out


if __name__ == "__main__":
    key = jax.random.PRNGKey(0)
    k1, k2, k3, k4, k5 = jax.random.split(key, 5)

    B, Q, C, G = 2, 8, NUM_CLASSES, 3
    outputs = {
        "pred_logits": jax.random.normal(k1, (B, Q, C), jnp.float32),
        "pred_boxes": jax.nn.sigmoid(jax.random.normal(k2, (B, Q, 4), jnp.float32)),
    }
    targets = {
        "labels": jax.random.randint(k3, (B, G), 0, C, jnp.int32),
        "boxes": jax.nn.sigmoid(jax.random.normal(k4, (B, G, 4), jnp.float32)),
    }
    cls_labels = jax.random.randint(k5, (B, C), 0, 2, jnp.int32)   # unused branches
    mask_labels = None

    losses = set_criterion_forward(outputs, targets, cls_labels, mask_labels)
    losses = jax.block_until_ready(losses)
    print("KERNEL_OK")
</pallas_src>

<mosaic_0001>
module attributes {stable_mosaic.version = 11 : i64} {
  func.func @_fused_logits_kernel(%arg0: i32, %arg1: memref<1x1x128xf32, #tpu.memory_space<vmem>>, %arg2: memref<1x8x16xf32, #tpu.memory_space<vmem>>, %arg3: memref<1x8x128xf32, #tpu.memory_space<vmem>>) attributes {dimension_semantics = [#tpu.dimension_semantics<parallel>], iteration_bounds = array<i64: 2>, scalar_prefetch = 0 : i64, scratch_operands = 0 : i64, tpu.core_type = #tpu.core_type<tc>, window_params = [{transform_indices = @transform_0, window_bounds = array<i64: 1, 1, 128>}, {transform_indices = @transform_1, window_bounds = array<i64: 1, 8, 16>}, {transform_indices = @transform_2, window_bounds = array<i64: 1, 8, 128>}]} {
    %c0 = arith.constant 0 : index
    %c0_0 = arith.constant 0 : index
    %c0_1 = arith.constant 0 : index
    %0 = vector.load %arg1[%c0, %c0_0, %c0_1] : memref<1x1x128xf32, #tpu.memory_space<vmem>>, vector<1x1x128xf32>
    %1 = math.absf %0 : vector<1x1x128xf32>
    %cst = arith.constant 0.000000e+00 : f32
    %2 = vector.broadcast %cst : f32 to vector<1x1x128xf32>
    %3 = arith.subf %2, %1 : vector<1x1x128xf32>
    %4 = math.exp %3 : vector<1x1x128xf32>
    %cst_2 = arith.constant 1.000000e+00 : f32
    %5 = vector.broadcast %cst_2 : f32 to vector<1x1x128xf32>
    %6 = arith.addf %5, %4 : vector<1x1x128xf32>
    %7 = tpu.reciprocal %6 {approx = true} : vector<1x1x128xf32> -> vector<1x1x128xf32>
    %cst_3 = arith.constant 0.000000e+00 : f32
    %8 = vector.broadcast %cst_3 : f32 to vector<1x1x128xf32>
    %9 = arith.cmpf oge, %0, %8 : vector<1x1x128xf32>
    %10 = arith.mulf %4, %7 : vector<1x1x128xf32>
    %11 = arith.select %9, %7, %10 : vector<1x1x128xi1>, vector<1x1x128xf32>
    %cst_4 = arith.constant 0.000000e+00 : f32
    %12 = vector.broadcast %cst_4 : f32 to vector<1x1x128xf32>
    %13 = arith.maximumf %0, %12 : vector<1x1x128xf32>
    %cst_5 = arith.constant 1.000000e+00 : f32
    %14 = vector.broadcast %cst_5 : f32 to vector<1x1x128xf32>
    %15 = arith.addf %14, %4 : vector<1x1x128xf32>
    %16 = math.log %15 : vector<1x1x128xf32>
    %17 = arith.addf %13, %16 : vector<1x1x128xf32>
    %cst_6 = arith.constant 7.500000e-01 : f32
    %18 = vector.broadcast %cst_6 : f32 to vector<1x1x128xf32>
    %19 = arith.mulf %18, %17 : vector<1x1x128xf32>
    %20 = arith.mulf %11, %11 : vector<1x1x128xf32>
    %21 = arith.mulf %19, %20 : vector<1x1x128xf32>
    %cst_7 = arith.constant dense<0.000000e+00> : vector<1x128xf32>
    %22 = vector.multi_reduction <add>, %21, %cst_7 [1] : vector<1x1x128xf32> to vector<1x128xf32>
    %23 = vector.shape_cast %22 : vector<1x128xf32> to vector<1x1x128xf32>
    %c0_8 = arith.constant 0 : index
    %c0_9 = arith.constant 0 : index
    %c0_10 = arith.constant 0 : index
    %24 = vector.load %arg2[%c0_8, %c0_9, %c0_10] : memref<1x8x16xf32, #tpu.memory_space<vmem>>, vector<1x8x16xf32>
    %25 = vector.extract_strided_slice %24 {offsets = [0, 0, 0], sizes = [1, 8, 15], strides = [1, 1, 1]} : vector<1x8x16xf32> to vector<1x8x15xf32>
    %cst_11 = arith.constant dense<0xFF800000> : vector<1x8xf32>
    %26 = vector.multi_reduction <maximumf>, %25, %cst_11 [2] : vector<1x8x15xf32> to vector<1x8xf32>
    %27 = vector.shape_cast %26 : vector<1x8xf32> to vector<1x8x1xf32>
    %28 = vector.extract_strided_slice %24 {offsets = [0, 0, 15], sizes = [1, 8, 1], strides = [1, 1, 1]} : vector<1x8x16xf32> to vector<1x8x1xf32>
    %29 = arith.cmpf ole, %28, %27 : vector<1x8x1xf32>
    %30 = arith.extui %29 : vector<1x8x1xi1> to vector<1x8x1xi32>
    %31 = arith.sitofp %30 : vector<1x8x1xi32> to vector<1x8x1xf32>
    %cst_12 = arith.constant dense<0.000000e+00> : vector<1xf32>
    %32 = vector.multi_reduction <add>, %31, %cst_12 [1, 2] : vector<1x8x1xf32> to vector<1xf32>
    %33 = vector.shape_cast %32 : vector<1xf32> to vector<1x1x1xf32>
    %34 = tpu.iota {dimensions = array<i32: 1>} : vector<1x8x128xi32>
    %c0_i32 = arith.constant 0 : i32
    %35 = vector.broadcast %c0_i32 : i32 to vector<1x8x128xi32>
    %36 = arith.cmpi eq, %34, %35 : vector<1x8x128xi32>
    %cst_13 = arith.constant 0.000000e+00 : f32
    %37 = vector.shape_cast %23 : vector<1x1x128xf32> to vector<1x1x128xf32>
    %38 = vector.broadcast %37 : vector<1x1x128xf32> to vector<1x8x128xf32>
    %39 = vector.broadcast %cst_13 : f32 to vector<1x8x128xf32>
    %40 = arith.select %36, %38, %39 : vector<1x8x128xi1>, vector<1x8x128xf32>
    %c1_i32 = arith.constant 1 : i32
    %41 = vector.broadcast %c1_i32 : i32 to vector<1x8x128xi32>
    %42 = arith.cmpi eq, %34, %41 : vector<1x8x128xi32>
    %43 = vector.shape_cast %33 : vector<1x1x1xf32> to vector<1x1x1xf32>
    %44 = vector.broadcast %43 : vector<1x1x1xf32> to vector<1x8x128xf32>
    %45 = arith.select %42, %44, %40 : vector<1x8x128xi1>, vector<1x8x128xf32>
    %c0_14 = arith.constant 0 : index
    %c0_15 = arith.constant 0 : index
    %c0_16 = arith.constant 0 : index
    %46 = vector.load %arg3[%c0_14, %c0_15, %c0_16] : memref<1x8x128xf32, #tpu.memory_space<vmem>>, vector<1x8x128xf32>
    tpu.vector_store %arg3[%c0_14, %c0_15, %c0_16], %45 {strides = array<i32>} : memref<1x8x128xf32, #tpu.memory_space<vmem>>, vector<1x8x128xf32>,
    return
  }
  func.func @transform_0(%arg0: i32) -> (i32, i32, i32) {
    %c0_i32 = arith.constant 0 : i32
    %c0_i32_0 = arith.constant 0 : i32
    %c0_i32_1 = arith.constant 0 : i32
    return %arg0, %c0_i32, %c0_i32_0 : i32, i32, i32
  }
  func.func @transform_1(%arg0: i32) -> (i32, i32, i32) {
    %c0_i32 = arith.constant 0 : i32
    %c0_i32_0 = arith.constant 0 : i32
    %c0_i32_1 = arith.constant 0 : i32
    return %arg0, %c0_i32, %c0_i32_0 : i32, i32, i32
  }
  func.func @transform_2(%arg0: i32) -> (i32, i32, i32) {
    %c0_i32 = arith.constant 0 : i32
    %c0_i32_0 = arith.constant 0 : i32
    %c0_i32_1 = arith.constant 0 : i32
    return %arg0, %c0_i32, %c0_i32_0 : i32, i32, i32
  }
}

</mosaic_0001>

<bundles_post_ra>
// kernel: tpu_custom_call.1
= control target key start
LH: loop header
LB: loop body
LE: loop exit
PB: predicated region body
PF: predicated region fallthrough
CT: control target
= control target key end

     0   :  { %7 = vsyncpa [#allocation3], 0  ;;  %s739_s0 = inlined_call_operand.hbm [shape: f32[2,1,128], index: 0, kind: input, shape index: {}]   ;;  %s740_s1 = inlined_call_operand.hbm [shape: f32[2,8,16], index: 1, kind: input, shape index: {}]   ;;  %s741_s2 = inlined_call_operand.hbm [shape: f32[2,8,128], index: 2, kind: output, shape index: {}]  }
   0x1   :  { %9 = vsyncpa [#allocation3 + $0x1], 0 }
   0x2   :  { %10 = vsyncpa [#allocation6], 0 }
   0x3   :  { %12 = vsyncpa [#allocation6 + $0x1], 0 }
   0x4   :  { %13 = vsyncpa [#allocation4], 0 }
   0x5   :  { %15 = vsyncpa [#allocation4 + $0x1], 0  ;;  %s572_s9 = smov 0   ;;  %s574_s10 = smov 0  }
   0x6   :  { %s576_s11 = smov 0   ;;  %s578_s12 = smov 0  }
   0x7 LB: > { %s593_s13 = sadd.s32 4294967295, %s553_s12   ;;  %s351_s14 = sadd.s32 4294967294, %s553_s12   ;;  %s553_s12 = sphi %s578_s12, %s752_s12   ;;  %s549_s11 = sphi %s576_s11, %s751_s11   ;;  %s545_s10 = sphi %s574_s10, %s750_s10   ;;  %s541_s9 = sphi %s572_s9, %s749_s9  }
   0x8   : > { %s597_s15 = sadd.s32 1, %s553_s12   ;;  %s28_s16 = sadd.s32 1, %s549_s11 }
   0x9   : > { %s25_s17 = ssub.s32 %s553_s12, %s597_s15  ;;  %p35_p0 = scmp.ne.s32.totalorder %s549_s11, %s545_s10 }
   0xa   : > { %p26_p1 = scmp.eq.s32.totalorder %s25_s17, 0  ;;  %p36_p2 = scmp.eq.s32.totalorder %s553_s12, 0 }
   0xb   : > { %p41_p3 = scmp.ne.s32.totalorder %s545_s10, %s541_s9  ;;  %p42_p4 = scmp.eq.s32.totalorder %s593_s13, 0 }
   0xc   : > { %s609_s18 = scalar_select %p26_p1, %s549_s11, %s28_s16  }
   0xd   : > { %p611_p5 = por %p36_p2, %p35_p0  ;;  %p615_p6 = por %p42_p4, %p41_p3 }
   0xe   : > { %p91_p7 = scmp.eq.s32.totalorder %s593_s13, 1  ;;  %p97_p8 = scmp.eq.s32.totalorder %s351_s14, 1 }
   0xf   : > { %p381_p10 = scmp.lt.s32.totalorder %s553_s12, 2  ;;  %s631_s23 = sand.u32 1, %s549_s11  }
  0x10   : > { %p622_p11 = por %p91_p7, %p35_p0  ;;  %p626_p12 = por %p97_p8, %p41_p3 }
  0x11   : > { %s123_s26 = scalar_lea.hbm %s739_s0, %s553_s12  ;;  %s120_s28 = scalar_lea.vmem [#allocation2], %s631_s23 }
  0x12   : > { %s125_s27 = sshll.u32 %s123_s26, 4  ;;  %s127_s29 = sshll.u32 %s120_s28, 4  ;;  %s126_s27 = int_to_ptr.hbm [resolvable:$true] %s125_s27  ;;  %s128_s29 = int_to_ptr.vmem [resolvable:$true] %s127_s29 }
  0x13   : > { %p640_p13 = pnand %p381_p10, %p611_p5  ;;  %p356_p0 = scmp.ge.s32.totalorder %s553_s12, 1 }
  0x14   : > { %p151_p1 = scmp.lt.s32.totalorder %s553_s12, 3  ;;  %s354_s3 = sshll.u32 %s631_s23, 3 }
  0x15   : > { %s118_s4 = scalar_lea.sflag [#allocation3], %s631_s23  ;;  %s423_s5 = sshra.s32 %s126_s27, 4  ;;  %s424_s5 = int_to_ptr.hbm [resolvable:$true] %s423_s5 }
  0x16   : > { %s425_s6 = scalar_lea.hbm %s424_s5, 1  ;;  %p427_p3 = pneg %p640_p13 }
  0x17   : > { %p426_p2 = scmp.ne.s32.totalorder %s424_s5, %s425_s6  ;;  %s430_s14 = scalar_lea.hbm %s739_s0, 2 }
  0x18   : > { %p431_p5 = scmp.lt.s32.totalorder %s424_s5, %s739_s0  ;;  %p432_p8 = scmp.lt.s32.totalorder %s430_s14, %s425_s6 }
  0x19   : > { %p428_p4 = pnand %p427_p3, %p426_p2 }
  0x1a   : > { %p433_p10 = por %p432_p8, %p431_p5 }
  0x1b   : > { %p429_p7 = pneg %p428_p4 }
  0x1d   : > { %p434_p9 = pnand %p433_p10, %p429_p7 }
  0x1f   : > { %437 = shalt.err (!%p434_p9)
}
  0x20   : > { %373 = dma.hbm_to_vmem [thread:$0]  (!%p640_p13), %s126_s27, 16, %s128_s29, %s118_s4  }
  0x21   : > { %p665_p2 = pnand %p356_p0, %p151_p1  ;;  %s355_s24 = sshll.u32 %s553_s12, 3 }
  0x22   : > { %s138_s25 = scalar_lea.vmem [#allocation5], %s354_s3  ;;  %s142_s6 = scalar_lea.hbm %s740_s1, %s355_s24 }
  0x23   : > { %s146_s26 = sshll.u32 %s138_s25, 4  ;;  %s144_s7 = sshll.u32 %s142_s6, 4  ;;  %s147_s26 = int_to_ptr.vmem [resolvable:$true] %s146_s26  ;;  %s145_s7 = int_to_ptr.hbm [resolvable:$true] %s144_s7 }
  0x24   : > { %s135_s8 = scalar_lea.sflag [#allocation6], %s631_s23  ;;  %s453_s14 = sshra.s32 %s145_s7, 4  ;;  %s454_s14 = int_to_ptr.hbm [resolvable:$true] %s453_s14 }
  0x25   : > { %s455_s27 = scalar_lea.hbm %s454_s14, 8  ;;  %s460_s3 = scalar_lea.hbm %s740_s1, 16 }
  0x26   : > { %p456_p9 = scmp.ne.s32.totalorder %s454_s14, %s455_s27  ;;  %p461_p4 = scmp.lt.s32.totalorder %s454_s14, %s740_s1 }
  0x27   : > { %p462_p7 = scmp.lt.s32.totalorder %s460_s3, %s455_s27 }
  0x28   : > { %p458_p0 = pnand %p456_p9, %p427_p3 }
  0x29   : > { %p463_p5 = por %p462_p7, %p461_p4 }
  0x2a   : > { %p459_p1 = pneg %p458_p0 }
  0x2c   : > { %p464_p8 = pnand %p463_p5, %p459_p1 }
  0x2e   : > { %467 = shalt.err (!%p464_p8)
}
  0x2f   : > { %376 = dma.hbm_to_vmem [thread:$0]  (!%p640_p13), %s145_s7, 128, %s147_s26, %s135_s8  }
  0x30   : > { %155 = sbr.rel (%p665_p2) target bundleno = 425 (0x1a9), region = 28  ;;  %s688_s23 = sand.u32 (!%p665_p2), 1, %s545_s10  }
  0x31   : > { %s158_s24 = scalar_lea.sflag (!%p665_p2), [#allocation3], %s688_s23  ;;  %s160_s25 = scalar_lea.vmem (!%p665_p2), [#allocation2], %s688_s23 }
  0x35   : > { %528 = dma.done.wait (%p615_p6), %s158_s24, 16  }
  0x36   : > { %530 = vsyncadd (%p615_p6), %s158_s24, 4294967280  ;;  %s357_s30 = sshll.u32 %s688_s23, 3  ;;  %s167_s19 = scalar_lea.sflag [#allocation6], %s688_s23 }
  0x37   : > { %s170_s26 = scalar_lea.vmem [#allocation5], %s357_s30 }
  0x38   : > { %532 = dma.done.wait (%p615_p6), %s167_s19, 128  }
  0x39   : > { %534 = vsyncadd (%p615_p6), %s167_s19, 4294967168  ;;  %vm215_vm0 = vcmask 121856   ;;  %v214_v0 = vld [vmem:[%s170_s26] sm:$0xff]  ;;  %v555_v3 = vmov 0.0   ;;  %s556_s28 = smov 113   ;;  %vm226_vm2 = vcmask 7168   ;;  %v236_v22 = vlaneseq }
  0x3a   : > { %v216_v1 = vsel %vm215_vm0, %v214_v0, -inf  ;;  %v196_v7 = vld [vmem:[%s160_s25] sm:$0x1]  ;;  %s361_s20 = sshll.u32 %s593_s13, 3  ;;  %s195_s8 = scalar_lea.vmem [#allocation7], %s357_s30 }
  0x3b   : > { %217 = vmax.xlane.f32.xlu0 %v216_v1  ;;  %v197_v8 = vand.u32 2147483647, %v196_v7  ;;  %v206_v15 = vmax.f32 %v196_v7, 0.0  ;;  %vm203_vm3 = vcmp.ge.f32.partialorder %v196_v7, 0.0  ;;  %v237_v27 = vshrl.u32 %v236_v22, 7  ;;  %s257_s7 = scalar_lea.hbm %s741_s2, %s361_s20  ;;  %s259_s14 = sshll.u32 %s195_s8, 4  ;;  %s260_s14 = int_to_ptr.vmem [resolvable:$true] %s259_s14 }
  0x3c   : > { %s261_s27 = sshll.u32 %s257_s7, 4  ;;  %s247_s13 = scalar_lea.sflag [#allocation4], %s688_s23  ;;  %s262_s27 = int_to_ptr.hbm [resolvable:$true] %s261_s27 }
  0x3d   : > { %v198_v9 = vsub.f32 0.0, %v197_v8  ;;  %vm238_vm4 = vcmp.eq.s32.totalorder %v237_v27, 0  ;;  %vm243_vm5 = vcmp.eq.s32.totalorder %v237_v27, 1  ;;  %s497_s29 = sshra.s32 %s262_s27, 4  ;;  %s503_s17 = scalar_lea.hbm %s741_s2, 16  ;;  %s498_s29 = int_to_ptr.hbm [resolvable:$true] %s497_s29 }
  0x3e   : > { %s499_s4 = scalar_lea.hbm %s498_s29, 8  ;;  %p504_p10 = scmp.lt.s32.totalorder %s498_s29, %s741_s2 }
  0x3f   : > { %v199_v10 = vmul.f32 1.442695, %v198_v9  ;;  %p500_p6 = scmp.ne.s32.totalorder %s498_s29, %s499_s4  ;;  %p505_p2 = scmp.lt.s32.totalorder %s503_s17, %s499_s4 }
  0x41   : > { %417 = vpow2.f32 %v199_v10  ;;  %p501_p13 = pnand %p500_p6, %p622_p11  ;;  %p506_p9 = por %p505_p2, %p504_p10 }
  0x43   : > { %p502_p3 = pneg %p501_p13 }
  0x45   : > { %p507_p0 = pnand %p506_p9, %p502_p3 }
  0x47   : > { %v418_v11 = vpop.eup %417 }
  0x48   : > { %v201_v12 = vadd.f32 1.0, %v418_v11 }
  0x4a   : > { %419 = vlog2.f32 %v201_v12 }
  0x4b   : > { %421 = vrcp.f32 %v201_v12 }
  0x50   : > { %v420_v13 = vpop.eup %419 }
  0x51   : > { %v422_v14 = vpop.eup %421  ;;  %v208_v16 = vmul.f32 0.6931472, %v420_v13 }
  0x52   : > { %v204_v17 = vmul.f32 %v422_v14, %v418_v11 }
  0x53   : > { %v209_v18 = vadd.f32 %v208_v16, %v206_v15 }
  0x54   : > { %v205_v19 = vsel %vm203_vm3, %v422_v14, %v204_v17 }
  0x55   : > { %v210_v20 = vmul.f32 0.75, %v209_v18  ;;  %v211_v21 = vmul.f32 %v205_v19, %v205_v19 }
  0x57   : > { %v212_v25 = vmul.f32 %v211_v21, %v210_v20 }
  0x59   : > { %v240_v29 = vperm.slane %v212_v25, 0 }
  0x5b   : > { %v242_v32 = vsel %vm238_vm4, %v240_v29, 0.0 }
  0xae   : > { %v218_v2 = vpop.xlane.xlu0 %217 }
  0xaf   : > { %vm219_vm1 = vcmp.le.f32.partialorder %v214_v0, %v218_v2 }
  0xb0   : > { %v359_v4 = vsel %vm219_vm1, 1.0, %v555_v3 }
  0xb1   : > { %223 = vrot.lane.b32.xlu0 %v359_v4, %s556_s28 }
 0x123   : > { %v224_v5 = vpop.permute.xlu0 %223 }
 0x124   : > { %v227_v6 = vsel %vm226_vm2, %v224_v5, 0.0 }
 0x125   : > { %228 = vadd.xlane.f32.xlu1 %v227_v6 }
 0x198   : > { %v229_v23 = vpop.xlane.xlu1 %228 }
 0x199   : > { %v230_v24 = vrot.slane %v229_v23, 4 }
 0x19b   : > { %v231_v26 = vadd.f32 %v230_v24, %v229_v23 }
 0x19d   : > { %v232_v28 = vrot.slane %v231_v26, 2 }
 0x19f   : > { %v233_v30 = vadd.f32 %v232_v28, %v231_v26 }
 0x1a1   : > { %v234_v31 = vrot.slane %v233_v30, 1 }
 0x1a3   : > { %v235_v33 = vadd.f32 %v234_v31, %v233_v30 }
 0x1a5   : > { %v244_v34 = vsel %vm243_vm5, %v235_v33, %v242_v32 }
 0x1a6   : > { %245 = vst [vmem:[%s195_s8] sm:$0xff] %v244_v34 }
 0x1a7   : > { %510 = shalt.err (!%p507_p0)
}
 0x1a8   : > { %368 = dma.vmem_to_hbm [thread:$0]  (%p622_p11), %s260_s14, 128, %s262_s27, %s247_s13  }
 0x1a9 PF: > { %s273_s23 = sand.u32 1, %s541_s9   ;;  %p748_p1 = scmp.ge.s32.totalorder %s553_s12, 2 }
 0x1aa   : > { %s274_s30 = scalar_lea.sflag [#allocation4], %s273_s23 }
 0x1ab   : > { %p378_p4 = pnand %p748_p1, %p626_p12 }
 0x1ad   : > { %p379_p7 = pneg %p378_p4 }
 0x1af   : > { %536 = dma.done.wait (%p379_p7), %s274_s30, 128  }
 0x1b0   : > { %538 = vsyncadd (%p379_p7), %s274_s30, 4294967168  ;;  %p18_p5 = scmp.ge.s32.totalorder %s597_s15, 4   ;;  %s749_s9 = smov %s545_s10 }
 0x1b1   : > { %s750_s10 = smov %s549_s11  ;;  %s751_s11 = smov %s609_s18 }
 0x1b2   : > { %s752_s12 = smov %s597_s15  ;;  %20 = sbr.rel (!%p18_p5) target bundleno = 7 (0x7), region = 86 }
 0x1b7   :  { %280 = vsyncpa [#allocation3], 1 }
 0x1b8   :  { %282 = vsyncpa [#allocation3 + $0x1], 1 }
 0x1b9   :  { %283 = vsyncpa [#allocation6], 1 }
 0x1ba   :  { %285 = vsyncpa [#allocation6 + $0x1], 1 }
 0x1bb   :  { %286 = vsyncpa [#allocation4], 1 }
 0x1bc   :  { %288 = vsyncpa [#allocation4 + $0x1], 1 }

</bundles_post_ra>
